<compile_context>
chip_gen: v7x
topology: tpu7x:2x2x1
jax: 0.10.0
libtpu: 0.0.40
codegen_flags: <defaults>
</compile_context>

<pallas_src>
import jax
import jax.numpy as jnp
from jax import lax
from jax.experimental import pallas as pl
from jax.experimental.pallas import tpu as pltpu


_SQRT2 = 1.4142135623730951


def _gelu(x):
    # exact (erf-based) GELU == torch.nn.functional.gelu default
    return x * 0.5 * (1.0 + lax.erf(x / _SQRT2))


def _round_up(v, m):
    return (v + m - 1) // m * m


# --------------------------------------------------------------------------
# kernel body
# --------------------------------------------------------------------------
def _conv_block_body(x_hbm, w1_ref, b1_ref, w2_ref, b2_ref, wp_ref, bp_ref,
                     o_ref, xs_ref, dma_sem,
                     *, L, TL, K, dilation, pad, compute_dtype, has_projector):
    n = pl.program_id(0)          # batch
    t = pl.program_id(1)          # L tile
    rows_in = TL + 4 * pad        # input slab rows (tile + halo for conv1∘conv2)
    rows_h = TL + 2 * pad         # conv1 rows needed to produce this tile

    # ---- fetch input slab (tile + halo) from HBM ---------------------------
    start = pl.multiple_of(t * TL, 8)        # TL is a multiple of 8
    cp = pltpu.make_async_copy(
        x_hbm.at[n, pl.ds(start, rows_in), :], xs_ref, dma_sem)
    cp.start()
    cp.wait()

    xs = xs_ref[...]                                   # (rows_in, Cin_pad)

    # ---- residual: 1x1-conv projector, or identity when Cin == Cout --------
    x_center = xs[2 * pad:2 * pad + TL, :]             # rows of this tile
    if has_projector:
        res = jnp.dot(x_center, wp_ref[...],
                      preferred_element_type=jnp.float32) + bp_ref[...]
    else:
        res = x_center.astype(jnp.float32)

    # ---- conv1: one deep matmul over an im2col of gelu(x) ------------------
    # zero padding of conv1 comes for free: the HBM input is pre-padded with
    # zeros outside [0, L) and gelu(0) == 0.
    g1 = _gelu(xs.astype(jnp.float32)).astype(compute_dtype)
    im1 = jnp.concatenate(
        [g1[k * dilation:k * dilation + rows_h, :] for k in range(K)],
        axis=-1)                                       # (rows_h, K*Cin_pad)
    h = jnp.dot(im1, w1_ref[...],
                preferred_element_type=jnp.float32) + b1_ref[...]

    # conv2's zero padding: rows of h whose global position falls outside the
    # real sequence [0, L) must be zero before feeding conv2.
    j = lax.broadcasted_iota(jnp.int32, (rows_h, 1), 0)
    gpos = t * TL - pad + j
    inb = jnp.logical_and(gpos >= 0, gpos < L).astype(jnp.float32)
    g2 = (_gelu(h) * inb).astype(compute_dtype)        # (rows_h, Cout_pad)

    # ---- conv2: one deep matmul --------------------------------------------
    im2 = jnp.concatenate(
        [g2[k * dilation:k * dilation + TL, :] for k in range(K)],
        axis=-1)                                       # (TL, K*Cout_pad)
    out = jnp.dot(im2, w2_ref[...],
                  preferred_element_type=jnp.float32) + b2_ref[...] + res
    o_ref[0] = out.astype(o_ref.dtype)


def _make_kernel(has_projector, **kw):
    if has_projector:
        def kernel(x_hbm, w1, b1, w2, b2, wp, bp, o_ref, xs_ref, sem):
            _conv_block_body(x_hbm, w1, b1, w2, b2, wp, bp, o_ref, xs_ref, sem,
                             has_projector=True, **kw)
    else:
        def kernel(x_hbm, w1, b1, w2, b2, o_ref, xs_ref, sem):
            _conv_block_body(x_hbm, w1, b1, w2, b2, None, None, o_ref, xs_ref,
                             sem, has_projector=False, **kw)
    return kernel


# --------------------------------------------------------------------------
# wrapper
# --------------------------------------------------------------------------
def conv_block_pallas(x_ncl, w1_oik, b1, w2_oik, b2, wp_oik=None, bp=None,
                      *, kernel_size, dilation=1, tile_l=256,
                      compute_dtype=jnp.float32):
    """Fused ConvBlock forward. x_ncl: (N, C_in, L) f32 -> (N, C_out, L) f32."""
    N, Cin, L = x_ncl.shape
    Cout = w1_oik.shape[0]
    K = kernel_size
    rf = (K - 1) * dilation + 1
    # TODO(synk): even receptive-field case (PyTorch slices out[:, :-1], i.e.
    # drops the last channel) not implemented; only odd rf is supported.
    assert rf % 2 == 1, "only odd receptive fields supported"
    pad = rf // 2

    has_projector = wp_oik is not None
    assert has_projector or Cin == Cout

    # lane-dense channel padding (multiple of 128) and L tiling
    Cin_pad = _round_up(Cin, 128)
    Cout_pad = _round_up(Cout, 128)
    TL = max(8, min(_round_up(tile_l, 8), _round_up(L, 8)))
    n_tiles = -(-L // TL)
    L_t = n_tiles * TL

    # Channels-last layout for MXU matmuls; pre-pad L with 2*pad zero halo on
    # each side (covers both conv paddings) plus the tile-grid round-up.
    # TODO(synk): a channels-last caller contract would remove these two
    # full-HBM transpose passes around the pallas_call.
    x_nlc = jnp.transpose(x_ncl, (0, 2, 1))                       # (N, L, Cin)
    x_p = jnp.pad(x_nlc, ((0, 0), (2 * pad, (L_t - L) + 2 * pad),
                          (0, Cin_pad - Cin))).astype(compute_dtype)

    def _pad_w(w_oik, ci, ci_pad):
        w = jnp.transpose(w_oik, (2, 1, 0))                       # (K, ci, Cout)
        w = jnp.pad(w, ((0, 0), (0, ci_pad - ci), (0, Cout_pad - Cout)))
        return w.reshape(w.shape[0] * ci_pad, Cout_pad).astype(compute_dtype)

    w1_p = _pad_w(w1_oik, Cin, Cin_pad)                # (K*Cin_pad,  Cout_pad)
    w2_p = _pad_w(w2_oik, Cout, Cout_pad)              # (K*Cout_pad, Cout_pad)
    b1_p = jnp.pad(b1, (0, Cout_pad - Cout)).reshape(1, Cout_pad).astype(jnp.float32)
    b2_p = jnp.pad(b2, (0, Cout_pad - Cout)).reshape(1, Cout_pad).astype(jnp.float32)

    in_specs = [
        pl.BlockSpec(memory_space=pl.ANY),             # x: manual halo DMA
        pl.BlockSpec((K * Cin_pad, Cout_pad), lambda n, t: (0, 0)),
        pl.BlockSpec((1, Cout_pad), lambda n, t: (0, 0)),
        pl.BlockSpec((K * Cout_pad, Cout_pad), lambda n, t: (0, 0)),
        pl.BlockSpec((1, Cout_pad), lambda n, t: (0, 0)),
    ]
    args = [x_p, w1_p, b1_p, w2_p, b2_p]
    if has_projector:
        wp_p = jnp.transpose(wp_oik, (2, 1, 0))[0]                # (Cin, Cout)
        wp_p = jnp.pad(wp_p, ((0, Cin_pad - Cin),
                              (0, Cout_pad - Cout))).astype(compute_dtype)
        bp_p = jnp.pad(bp, (0, Cout_pad - Cout)).reshape(1, Cout_pad).astype(jnp.float32)
        in_specs += [pl.BlockSpec((Cin_pad, Cout_pad), lambda n, t: (0, 0)),
                     pl.BlockSpec((1, Cout_pad), lambda n, t: (0, 0))]
        args += [wp_p, bp_p]

    kernel = _make_kernel(has_projector, L=L, TL=TL, K=K, dilation=dilation,
                          pad=pad, compute_dtype=compute_dtype)

    out_nlc = pl.pallas_call(
        kernel,
        out_shape=jax.ShapeDtypeStruct((N, L_t, Cout_pad), jnp.float32),
        grid_spec=pltpu.PrefetchScalarGridSpec(
            num_scalar_prefetch=0,
            grid=(N, n_tiles),
            in_specs=in_specs,
            out_specs=pl.BlockSpec((1, TL, Cout_pad), lambda n, t: (n, t, 0)),
            scratch_shapes=[
                pltpu.VMEM((TL + 4 * pad, Cin_pad), compute_dtype),
                pltpu.SemaphoreType.DMA(()),
            ],
        ),
        compiler_params=pltpu.CompilerParams(
            dimension_semantics=("parallel", "parallel"),
            vmem_limit_bytes=64 * 1024 * 1024),
    )(*args)

    out = out_nlc[:, :L, :Cout]
    return jnp.transpose(out, (0, 2, 1))               # back to NCL


# ---------------- pure-JAX reference (for correctness check) ----------------
def _ref_conv1d(x_ncl, w_oik, b, dilation, pad):
    y = lax.conv_general_dilated(
        x_ncl, w_oik, window_strides=(1,), padding=[(pad, pad)],
        rhs_dilation=(dilation,), dimension_numbers=("NCH", "OIH", "NCH"))
    return y + b[None, :, None]


def conv_block_ref(x_ncl, w1, b1, w2, b2, wp=None, bp=None,
                   *, kernel_size, dilation):
    pad = ((kernel_size - 1) * dilation + 1) // 2
    residual = x_ncl if wp is None else _ref_conv1d(x_ncl, wp, bp, 1, 0)
    out = _gelu(x_ncl)
    out = _ref_conv1d(out, w1, b1, dilation, pad)
    out = _gelu(out)
    out = _ref_conv1d(out, w2, b2, dilation, pad)
    return out + residual


if __name__ == "__main__":
    # ConvBlock(in=4, out=8, k=3, d=2) -> receptive field 5 (odd)
    N, Cin, Cout, L = 2, 4, 8, 16
    kernel_size, dilation = 3, 2

    key = jax.random.PRNGKey(0)
    ks = jax.random.split(key, 10)

    def uinit(k, shape, fan_in):
        bound = 1.0 / jnp.sqrt(jnp.float32(fan_in))
        return jax.random.uniform(k, shape, jnp.float32, -bound, bound)

    x = jax.random.normal(ks[0], (N, Cin, L), jnp.float32)
    w1 = uinit(ks[1], (Cout, Cin, kernel_size), Cin * kernel_size)
    b1 = uinit(ks[2], (Cout,), Cin * kernel_size)
    w2 = uinit(ks[3], (Cout, Cout, kernel_size), Cout * kernel_size)
    b2 = uinit(ks[4], (Cout,), Cout * kernel_size)
    wp = uinit(ks[5], (Cout, Cin, 1), Cin)       # projector (Cin != Cout)
    bp = uinit(ks[6], (Cout,), Cin)

    ref = conv_block_ref(x, w1, b1, w2, b2, wp, bp,
                         kernel_size=kernel_size, dilation=dilation)

    # 1) f32 MXU operands; tile_l=8 so the halo/mask logic is exercised across
    #    multiple L tiles (L=16 -> 2 tiles per batch).
    out = conv_block_pallas(x, w1, b1, w2, b2, wp, bp,
                            kernel_size=kernel_size, dilation=dilation,
                            tile_l=8, compute_dtype=jnp.float32)
    out = jax.block_until_ready(out)
    assert out.shape == (N, Cout, L)
    assert jnp.allclose(out, ref, rtol=1e-4, atol=1e-5), (
        float(jnp.max(jnp.abs(out - ref))))

    # 2) bf16 MXU operands (v6e/v7x fast path), f32 accumulation -> looser tol.
    out_bf16 = conv_block_pallas(x, w1, b1, w2, b2, wp, bp,
                                 kernel_size=kernel_size, dilation=dilation,
                                 tile_l=8, compute_dtype=jnp.bfloat16)
    out_bf16 = jax.block_until_ready(out_bf16)
    assert jnp.allclose(out_bf16, ref, rtol=5e-2, atol=5e-2), (
        float(jnp.max(jnp.abs(out_bf16 - ref))))

    # 3) equal-channel case: projector skipped entirely, residual = x.
    xe = jax.random.normal(ks[7], (N, Cout, L), jnp.float32)
    w1e = uinit(ks[8], (Cout, Cout, kernel_size), Cout * kernel_size)
    b1e = uinit(ks[9], (Cout,), Cout * kernel_size)
    refe = conv_block_ref(xe, w1e, b1e, w2, b2,
                          kernel_size=kernel_size, dilation=dilation)
    oute = conv_block_pallas(xe, w1e, b1e, w2, b2,
                             kernel_size=kernel_size, dilation=dilation,
                             tile_l=8, compute_dtype=jnp.float32)
    oute = jax.block_until_ready(oute)
    assert oute.shape == (N, Cout, L)
    assert jnp.allclose(oute, refe, rtol=1e-4, atol=1e-5), (
        float(jnp.max(jnp.abs(oute - refe))))

    print("KERNEL_OK")
</pallas_src>

<mosaic_0001>
module attributes {stable_mosaic.version = 11 : i64} {
  func.func @kernel(%arg0: i32, %arg1: i32, %arg2: memref<2x24x128xf32, #tpu.memory_space<any>>, %arg3: memref<384x128xf32, #tpu.memory_space<vmem>>, %arg4: memref<1x128xf32, #tpu.memory_space<vmem>>, %arg5: memref<384x128xf32, #tpu.memory_space<vmem>>, %arg6: memref<1x128xf32, #tpu.memory_space<vmem>>, %arg7: memref<128x128xf32, #tpu.memory_space<vmem>>, %arg8: memref<1x128xf32, #tpu.memory_space<vmem>>, %arg9: memref<1x8x128xf32, #tpu.memory_space<vmem>>, %arg10: memref<16x128xf32, #tpu.memory_space<vmem>>, %arg11: memref<!tpu.dma_semaphore, #tpu.memory_space<semaphore_mem>>) attributes {dimension_semantics = [#tpu.dimension_semantics<parallel>, #tpu.dimension_semantics<parallel>], iteration_bounds = array<i64: 2, 2>, scalar_prefetch = 0 : i64, scratch_operands = 2 : i64, tpu.core_type = #tpu.core_type<tc>, window_params = [{}, {pipeline_mode = #tpu.pipeline_mode<synchronous>, transform_indices = @transform_1, window_bounds = array<i64: 384, 128>}, {pipeline_mode = #tpu.pipeline_mode<synchronous>, transform_indices = @transform_2, window_bounds = array<i64: 1, 128>}, {pipeline_mode = #tpu.pipeline_mode<synchronous>, transform_indices = @transform_3, window_bounds = array<i64: 384, 128>}, {pipeline_mode = #tpu.pipeline_mode<synchronous>, transform_indices = @transform_4, window_bounds = array<i64: 1, 128>}, {pipeline_mode = #tpu.pipeline_mode<synchronous>, transform_indices = @transform_5, window_bounds = array<i64: 128, 128>}, {pipeline_mode = #tpu.pipeline_mode<synchronous>, transform_indices = @transform_6, window_bounds = array<i64: 1, 128>}, {transform_indices = @transform_7, window_bounds = array<i64: 1, 8, 128>}]} {
    %c8_i32 = arith.constant 8 : i32
    %0 = arith.muli %arg1, %c8_i32 : i32
    %1 = tpu.assume_multiple %0, 8 : i32
    %c0_i32 = arith.constant 0 : i32
    %2 = tpu.memref_slice %arg2[%arg0, %1, %c0_i32] : memref<2x24x128xf32, #tpu.memory_space<any>> -> memref<1x16x128xf32, #tpu.memory_space<any>>
    %3 = tpu.memref_squeeze %2 : memref<1x16x128xf32, #tpu.memory_space<any>> -> memref<16x128xf32, #tpu.memory_space<any>>
    tpu.enqueue_dma source(%3 : memref<16x128xf32, #tpu.memory_space<any>>) target(%arg10 : memref<16x128xf32, #tpu.memory_space<vmem>>) target_semaphore(%arg11 : memref<!tpu.dma_semaphore, #tpu.memory_space<semaphore_mem>>)
    %c0_i32_0 = arith.constant 0 : i32
    %4 = tpu.memref_slice %arg2[%arg0, %1, %c0_i32_0] : memref<2x24x128xf32, #tpu.memory_space<any>> -> memref<1x16x128xf32, #tpu.memory_space<any>>
    %5 = tpu.memref_squeeze %4 : memref<1x16x128xf32, #tpu.memory_space<any>> -> memref<16x128xf32, #tpu.memory_space<any>>
    tpu.wait_dma2 semaphore(%arg11 : memref<!tpu.dma_semaphore, #tpu.memory_space<semaphore_mem>>) src(%5 : memref<16x128xf32, #tpu.memory_space<any>>) dst(%arg10 : memref<16x128xf32, #tpu.memory_space<vmem>>)
    %c0 = arith.constant 0 : index
    %c0_1 = arith.constant 0 : index
    %6 = vector.load %arg10[%c0, %c0_1] : memref<16x128xf32, #tpu.memory_space<vmem>>, vector<16x128xf32>
    %7 = vector.extract_strided_slice %6 {offsets = [4, 0], sizes = [8, 128], strides = [1, 1]} : vector<16x128xf32> to vector<8x128xf32>
    %c0_2 = arith.constant 0 : index
    %c0_3 = arith.constant 0 : index
    %8 = vector.load %arg7[%c0_2, %c0_3] : memref<128x128xf32, #tpu.memory_space<vmem>>, vector<128x128xf32>
    %cst = arith.constant dense<0.000000e+00> : vector<8x128xf32>
    %9 = tpu.matmul %7, %8, %cst {dimension_numbers = #tpu.dot_dimension_numbers<[1], [0], [0], [1], [0, 0, 1, 1], [], []>} : vector<8x128xf32>, vector<128x128xf32>, vector<8x128xf32> -> vector<8x128xf32>
    %c0_4 = arith.constant 0 : index
    %c0_5 = arith.constant 0 : index
    %10 = vector.load %arg8[%c0_4, %c0_5] : memref<1x128xf32, #tpu.memory_space<vmem>>, vector<1x128xf32>
    %11 = vector.broadcast %10 : vector<1x128xf32> to vector<8x128xf32>
    %12 = arith.addf %9, %11 : vector<8x128xf32>
    %cst_6 = arith.constant 5.000000e-01 : f32
    %13 = vector.broadcast %cst_6 : f32 to vector<16x128xf32>
    %14 = arith.mulf %6, %13 : vector<16x128xf32>
    %cst_7 = arith.constant 1.41421354 : f32
    %15 = vector.broadcast %cst_7 : f32 to vector<16x128xf32>
    %16 = arith.divf %6, %15 : vector<16x128xf32>
    %17 = math.erf %16 : vector<16x128xf32>
    %cst_8 = arith.constant 1.000000e+00 : f32
    %18 = vector.broadcast %cst_8 : f32 to vector<16x128xf32>
    %19 = arith.addf %18, %17 : vector<16x128xf32>
    %20 = arith.mulf %14, %19 : vector<16x128xf32>
    %21 = vector.extract_strided_slice %20 {offsets = [0, 0], sizes = [12, 128], strides = [1, 1]} : vector<16x128xf32> to vector<12x128xf32>
    %22 = vector.extract_strided_slice %20 {offsets = [2, 0], sizes = [12, 128], strides = [1, 1]} : vector<16x128xf32> to vector<12x128xf32>
    %23 = vector.extract_strided_slice %20 {offsets = [4, 0], sizes = [12, 128], strides = [1, 1]} : vector<16x128xf32> to vector<12x128xf32>
    %24 = tpu.concatenate %21, %22, %23 in 1 : vector<12x128xf32>, vector<12x128xf32>, vector<12x128xf32> -> vector<12x384xf32>
    %c0_9 = arith.constant 0 : index
    %c0_10 = arith.constant 0 : index
    %25 = vector.load %arg3[%c0_9, %c0_10] : memref<384x128xf32, #tpu.memory_space<vmem>>, vector<384x128xf32>
    %cst_11 = arith.constant dense<0.000000e+00> : vector<12x128xf32>
    %26 = tpu.matmul %24, %25, %cst_11 {dimension_numbers = #tpu.dot_dimension_numbers<[1], [0], [0], [1], [0, 0, 1, 1], [], []>} : vector<12x384xf32>, vector<384x128xf32>, vector<12x128xf32> -> vector<12x128xf32>
    %c0_12 = arith.constant 0 : index
    %c0_13 = arith.constant 0 : index
    %27 = vector.load %arg4[%c0_12, %c0_13] : memref<1x128xf32, #tpu.memory_space<vmem>>, vector<1x128xf32>
    %28 = vector.broadcast %27 : vector<1x128xf32> to vector<12x128xf32>
    %29 = arith.addf %26, %28 : vector<12x128xf32>
    %30 = tpu.iota {dimensions = array<i32: 0>} : vector<12x1xi32>
    %c8_i32_14 = arith.constant 8 : i32
    %31 = arith.muli %arg1, %c8_i32_14 : i32
    %c2_i32 = arith.constant 2 : i32
    %32 = arith.subi %31, %c2_i32 : i32
    %33 = vector.broadcast %32 : i32 to vector<12x1xi32>
    %34 = arith.addi %33, %30 : vector<12x1xi32>
    %c0_i32_15 = arith.constant 0 : i32
    %35 = vector.broadcast %c0_i32_15 : i32 to vector<12x1xi32>
    %36 = arith.cmpi sge, %34, %35 : vector<12x1xi32>
    %c16_i32 = arith.constant 16 : i32
    %37 = vector.broadcast %c16_i32 : i32 to vector<12x1xi32>
    %38 = arith.cmpi slt, %34, %37 : vector<12x1xi32>
    %39 = arith.andi %36, %38 : vector<12x1xi1>
    %40 = arith.extui %39 : vector<12x1xi1> to vector<12x1xi32>
    %41 = arith.sitofp %40 : vector<12x1xi32> to vector<12x1xf32>
    %cst_16 = arith.constant 5.000000e-01 : f32
    %42 = vector.broadcast %cst_16 : f32 to vector<12x128xf32>
    %43 = arith.mulf %29, %42 : vector<12x128xf32>
    %cst_17 = arith.constant 1.41421354 : f32
    %44 = vector.broadcast %cst_17 : f32 to vector<12x128xf32>
    %45 = arith.divf %29, %44 : vector<12x128xf32>
    %46 = math.erf %45 : vector<12x128xf32>
    %cst_18 = arith.constant 1.000000e+00 : f32
    %47 = vector.broadcast %cst_18 : f32 to vector<12x128xf32>
    %48 = arith.addf %47, %46 : vector<12x128xf32>
    %49 = arith.mulf %43, %48 : vector<12x128xf32>
    %50 = vector.broadcast %41 : vector<12x1xf32> to vector<12x128xf32>
    %51 = arith.mulf %49, %50 : vector<12x128xf32>
    %52 = vector.extract_strided_slice %51 {offsets = [0, 0], sizes = [8, 128], strides = [1, 1]} : vector<12x128xf32> to vector<8x128xf32>
    %53 = vector.extract_strided_slice %51 {offsets = [2, 0], sizes = [8, 128], strides = [1, 1]} : vector<12x128xf32> to vector<8x128xf32>
    %54 = vector.extract_strided_slice %51 {offsets = [4, 0], sizes = [8, 128], strides = [1, 1]} : vector<12x128xf32> to vector<8x128xf32>
    %55 = tpu.concatenate %52, %53, %54 in 1 : vector<8x128xf32>, vector<8x128xf32>, vector<8x128xf32> -> vector<8x384xf32>
    %c0_19 = arith.constant 0 : index
    %c0_20 = arith.constant 0 : index
    %56 = vector.load %arg5[%c0_19, %c0_20] : memref<384x128xf32, #tpu.memory_space<vmem>>, vector<384x128xf32>
    %cst_21 = arith.constant dense<0.000000e+00> : vector<8x128xf32>
    %57 = tpu.matmul %55, %56, %cst_21 {dimension_numbers = #tpu.dot_dimension_numbers<[1], [0], [0], [1], [0, 0, 1, 1], [], []>} : vector<8x384xf32>, vector<384x128xf32>, vector<8x128xf32> -> vector<8x128xf32>
    %c0_22 = arith.constant 0 : index
    %c0_23 = arith.constant 0 : index
    %58 = vector.load %arg6[%c0_22, %c0_23] : memref<1x128xf32, #tpu.memory_space<vmem>>, vector<1x128xf32>
    %59 = vector.broadcast %58 : vector<1x128xf32> to vector<8x128xf32>
    %60 = arith.addf %57, %59 : vector<8x128xf32>
    %61 = arith.addf %60, %12 : vector<8x128xf32>
    %c0_24 = arith.constant 0 : index
    %c0_25 = arith.constant 0 : index
    %c0_26 = arith.constant 0 : index
    %62 = vector.load %arg9[%c0_24, %c0_25, %c0_26] : memref<1x8x128xf32, #tpu.memory_space<vmem>>, vector<1x8x128xf32>
    %63 = vector.shape_cast %62 : vector<1x8x128xf32> to vector<8x128xf32>
    %64 = vector.shape_cast %61 : vector<8x128xf32> to vector<1x8x128xf32>
    tpu.vector_store %arg9[%c0_24, %c0_25, %c0_26], %64 {strides = array<i32>} : memref<1x8x128xf32, #tpu.memory_space<vmem>>, vector<1x8x128xf32>,
    return
  }
  func.func @transform_1(%arg0: i32, %arg1: i32) -> (i32, i32) {
    %c0_i32 = arith.constant 0 : i32
    %c0_i32_0 = arith.constant 0 : i32
    %c0_i32_1 = arith.constant 0 : i32
    return %c0_i32, %c0_i32_0 : i32, i32
  }
  func.func @transform_2(%arg0: i32, %arg1: i32) -> (i32, i32) {
    %c0_i32 = arith.constant 0 : i32
    %c0_i32_0 = arith.constant 0 : i32
    %c0_i32_1 = arith.constant 0 : i32
    return %c0_i32, %c0_i32_0 : i32, i32
  }
  func.func @transform_3(%arg0: i32, %arg1: i32) -> (i32, i32) {
    %c0_i32 = arith.constant 0 : i32
    %c0_i32_0 = arith.constant 0 : i32
    %c0_i32_1 = arith.constant 0 : i32
    return %c0_i32, %c0_i32_0 : i32, i32
  }
  func.func @transform_4(%arg0: i32, %arg1: i32) -> (i32, i32) {
    %c0_i32 = arith.constant 0 : i32
    %c0_i32_0 = arith.constant 0 : i32
    %c0_i32_1 = arith.constant 0 : i32
    return %c0_i32, %c0_i32_0 : i32, i32
  }
  func.func @transform_5(%arg0: i32, %arg1: i32) -> (i32, i32) {
    %c0_i32 = arith.constant 0 : i32
    %c0_i32_0 = arith.constant 0 : i32
    %c0_i32_1 = arith.constant 0 : i32
    return %c0_i32, %c0_i32_0 : i32, i32
  }
  func.func @transform_6(%arg0: i32, %arg1: i32) -> (i32, i32) {
    %c0_i32 = arith.constant 0 : i32
    %c0_i32_0 = arith.constant 0 : i32
    %c0_i32_1 = arith.constant 0 : i32
    return %c0_i32, %c0_i32_0 : i32, i32
  }
  func.func @transform_7(%arg0: i32, %arg1: i32) -> (i32, i32, i32) {
    %c0_i32 = arith.constant 0 : i32
    %c0_i32_0 = arith.constant 0 : i32
    return %arg0, %arg1, %c0_i32 : i32, i32, i32
  }
}

</mosaic_0001>

<bundles_post_ra>
// kernel: tpu_custom_call.1
= control target key start
LH: loop header
LB: loop body
LE: loop exit
PB: predicated region body
PF: predicated region fallthrough
CT: control target
= control target key end

     0   :  { %s2336_s0 = inlined_call_operand.hbm [shape: f32[2,24,128], index: 0, kind: input, shape index: {}]   ;;  %s2337_s1 = inlined_call_operand.hbm [shape: f32[384,128], index: 1, kind: input, shape index: {}]   ;;  %s2338_s2 = inlined_call_operand.hbm [shape: f32[1,128], index: 2, kind: input, shape index: {}]   ;;  %s2339_s3 = inlined_call_operand.hbm [shape: f32[384,128], index: 3, kind: input, shape index: {}]   ;;  %s2340_s4 = inlined_call_operand.hbm [shape: f32[1,128], index: 4, kind: input, shape index: {}]   ;;  %s2341_s5 = inlined_call_operand.hbm [shape: f32[128,128], index: 5, kind: input, shape index: {}]   ;;  %s2342_s6 = inlined_call_operand.hbm [shape: f32[1,128], index: 6, kind: input, shape index: {}]   ;;  %s2343_s7 = inlined_call_operand.hbm [shape: f32[2,16,128], index: 7, kind: output, shape index: {}]  }
   0x1   :  { %2353 = sst [smem:[#allocation32_spill]] %s2338_s2 }
   0x2   :  { %2354 = sst [smem:[#allocation33_spill]] %s2340_s4 }
   0x3   :  { %12 = vsyncpa [#allocation5], 0 }
   0x4   :  { %13 = vsyncpa [#allocation8], 0 }
   0x5   :  { %14 = vsyncpa [#allocation11], 0 }
   0x6   :  { %15 = vsyncpa [#allocation14], 0 }
   0x7   :  { %16 = vsyncpa [#allocation6], 0 }
   0x8   :  { %18 = vsyncpa [#allocation6 + $0x1], 0  ;;  %s1974_s24 = smov 0   ;;  %s1976_s25 = smov 0  }
   0x9   :  { %s1978_s26 = smov 0   ;;  %s1980_s27 = smov 0  }
   0xa   :  { %s1982_s28 = smov 0   ;;  %s1984_s29 = smov 0  }
   0xb   :  { %s1986_s30 = smov 0   ;;  %s1988_s8 = smov 0  }
   0xc LB: > { %2355 = sst [smem:[#allocation26_spill]] %s1899_s26  ;;  %s1060_s9 = sadd.s32 4294967295, %s1919_s8   ;;  %s1919_s8 = sphi %s1988_s8, %s24_s8   ;;  %s1915_s30 = sphi %s1986_s30, %s2378_s30   ;;  %s1911_s29 = sphi %s1984_s29, %s2377_s29   ;;  %s1907_s28 = sphi %s1982_s28, %s2376_s28   ;;  %s1903_s27 = sphi %s1980_s27, %s2375_s27   ;;  %s1899_s26 = sphi %s1978_s26, %s2374_s26   ;;  %s1895_s25 = sphi %s1976_s25, %s2380_s25   ;;  %s1891_s24 = sphi %s1974_s24, %s2379_s24  }
   0xd   : > { %2356 = sst [smem:[#allocation27_spill]] %s1911_s29  ;;  %s1061_s10 = sadd.s32 4294967294, %s1919_s8  }
   0xe   : > { %2357 = sst [smem:[#allocation28_spill]] %s1915_s30  ;;  %s33_s11 = sadd.s32 1, %s1911_s29 }
   0xf   : > { %s36_s12 = sadd.s32 1, %s1915_s30  ;;  %p34_p0 = scmp.ge.s32.totalorder %s33_s11, 2 }
  0x10   : > { %s171_s13 = sadd.s32 1, %s1899_s26  ;;  %p181_p1 = scmp.ne.s32.totalorder %s1899_s26, %s1895_s25 }
  0x11   : > { %p182_p2 = scmp.eq.s32.totalorder %s1060_s9, 3  ;;  %s2382_s11 = smov (%p34_p0, %s33_s11), 0 }
  0x12   : > { %2358 = sst [smem:[#allocation29_spill]] %s2382_s11  ;;  %s2384_s12 = smov (!%p34_p0, %s36_s12), %s1915_s30 }
  0x13   : > { %s167_s14 = ssub.s32 %s1911_s29, %s2382_s11  ;;  %p2026_p3 = por %p182_p2, %p181_p1 }
  0x14   : > { %p38_p4 = scmp.ge.s32.totalorder %s2384_s12, 2  ;;  %p187_p5 = scmp.ne.s32.totalorder %s1895_s25, %s1891_s24 }
  0x15   : > { %s2359_s15 = scalar_select %p2026_p3, 1, 0 }
  0x16   : > { %p188_p6 = scmp.eq.s32.totalorder %s1061_s10, 3  ;;  %p1062_p7 = scmp.ge.s32.totalorder %s1919_s8, 1 }
  0x17   : > { %s2386_s12 = smov (%p38_p4, %s2384_s12), 0  ;;  %p195_p9 = scmp.lt.s32.totalorder %s1919_s8, 5 }
  0x18   : > { %2360 = sst [smem:[#allocation30_spill]] %s2386_s12  ;;  %p2035_p8 = por %p188_p6, %p187_p5 }
  0x19   : > { %s166_s17 = ssub.s32 %s1915_s30, %s2386_s12  ;;  %p2042_p10 = pnand %p1062_p7, %p195_p9 }
  0x1a   : > { %s2361_s16 = scalar_select %p2035_p8, 1, 0 }
  0x1b   : > { %s168_s18 = sor.u32 %s167_s14, %s166_s17  ;;  %p2046_p12 = scmp.eq.s32.totalorder %s1060_s9, 0 }
  0x1c   : > { %s2362_s19 = scalar_select %p2042_p10, 1, 0 }
  0x1d   : > { %p169_p11 = scmp.eq.s32.totalorder %s168_s18, 0  ;;  %p1495_p13 = pneg %p2042_p10 }
  0x1e   : > { %s2363_s20 = scalar_select %p2046_p12, 1, 0 }
  0x1f   : > { %s2053_s21 = scalar_select %p169_p11, %s1899_s26, %s171_s13  }
  0x20   : > { %p2057_p0 = pnand %p2046_p12, %p1495_p13  ;;  %s1921_s23 = smov [#allocation7]  }
  0x21   : > { %2364 = sst [smem:[#allocation31_spill]] %s2053_s21  ;;  %s221_s10 = sshll.u32 %s1921_s23, 4  ;;  %s222_s10 = int_to_ptr.vmem [resolvable:$true] %s221_s10 }
  0x22   : > { %s1922_s14 = smov [#allocation10]   ;;  %s2366_s2 = sld [smem:[#allocation32_spill]] }
  0x23   : > { %s245_s17 = sshll.u32 %s1922_s14, 4  ;;  %p2069_p2 = pneg %p2057_p0  ;;  %s246_s17 = int_to_ptr.vmem [resolvable:$true] %s245_s17 }
  0x28   : > { %s1615_s12 = scalar_lea.hbm %s2366_s2, 16 }
  0x29   : > { %p1616_p1 = scmp.ne.s32.totalorder %s2366_s2, %s1615_s12  ;;  %p1622_p6 = scmp.lt.u32.totalorder %s1615_s12, %s2366_s2 }
  0x2b   : > { %p1618_p4 = pnand %p2069_p2, %p1616_p1 }
  0x2d   : > { %p1619_p5 = pneg %p1618_p4 }
  0x2f   : > { %p1624_p7 = pnand %p1622_p6, %p1619_p5 }
  0x31   : > { %1627 = shalt.err (!%p1624_p7)
}
  0x32   : > { %s1628_s14 = scalar_lea.vmem %s222_s10, 16  ;;  %s1635_s30 = scalar_lea.vmem %s222_s10, 32 }
  0x33   : > { %p1629_p9 = scmp.ne.s32.totalorder %s222_s10, %s1628_s14  ;;  %p1636_p8 = scmp.lt.s32.totalorder %s222_s10, %s222_s10 }
  0x34   : > { %p1637_p3 = scmp.lt.s32.totalorder %s1635_s30, %s1628_s14 }
  0x35   : > { %p1631_p11 = pnand %p1629_p9, %p2069_p2 }
  0x36   : > { %p1638_p12 = por %p1637_p3, %p1636_p8 }
  0x37   : > { %p1632_p13 = pneg %p1631_p11 }
  0x39   : > { %p1639_p10 = pnand %p1638_p12, %p1632_p13 }
  0x3b   : > { %1642 = shalt.err (!%p1639_p10)
}
  0x3c   : > { %1501 = dma.hbm_to_vmem [thread:$0]  (!%p2057_p0), %s2366_s2, 16, %s222_s10, [#allocation8]  }
  0x3d   : > { %s2368_s4 = sld [smem:[#allocation33_spill]] }
  0x43   : > { %s1643_s18 = scalar_lea.hbm %s2368_s4, 16 }
  0x44   : > { %p1644_p1 = scmp.ne.s32.totalorder %s2368_s4, %s1643_s18  ;;  %p1650_p10 = scmp.lt.u32.totalorder %s1643_s18, %s2368_s4 }
  0x46   : > { %p1646_p3 = pnand %p1644_p1, %p2069_p2 }
  0x48   : > { %p1647_p8 = pneg %p1646_p3 }
  0x4a   : > { %p1652_p12 = pnand %p1650_p10, %p1647_p8 }
  0x4c   : > { %1655 = shalt.err (!%p1652_p12)
}
  0x4d   : > { %s1656_s11 = scalar_lea.vmem %s246_s17, 16  ;;  %s1663_s10 = scalar_lea.vmem %s246_s17, 32 }
  0x4e   : > { %p1657_p4 = scmp.ne.s32.totalorder %s246_s17, %s1656_s11  ;;  %p1664_p7 = scmp.lt.s32.totalorder %s246_s17, %s246_s17 }
  0x4f   : > { %p1665_p9 = scmp.lt.s32.totalorder %s1663_s10, %s1656_s11 }
  0x50   : > { %p1659_p5 = pnand %p1657_p4, %p2069_p2 }
  0x51   : > { %p1666_p11 = por %p1665_p9, %p1664_p7 }
  0x52   : > { %p1660_p6 = pneg %p1659_p5 }
  0x54   : > { %p1667_p13 = pnand %p1666_p11, %p1660_p6 }
  0x56   : > { %1670 = shalt.err (!%p1667_p13)
}
  0x57   : > { %1507 = dma.hbm_to_vmem [thread:$0]  (!%p2057_p0), %s2368_s4, 16, %s246_s17, [#allocation11]  }
  0x58   : > { %s1923_s29 = smov [#allocation4]   ;;  %s1671_s14 = scalar_lea.hbm %s2337_s1, 6144 }
  0x59   : > { %s207_s12 = sshll.u32 %s1923_s29, 4  ;;  %p1672_p1 = scmp.ne.s32.totalorder %s2337_s1, %s1671_s14  ;;  %s208_s12 = int_to_ptr.vmem [resolvable:$true] %s207_s12 }
  0x5a   : > { %p1678_p10 = scmp.lt.u32.totalorder %s1671_s14, %s2337_s1 }
  0x5b   : > { %p1674_p3 = pnand %p1672_p1, %p2069_p2 }
  0x5d   : > { %p1675_p8 = pneg %p1674_p3 }
  0x5f   : > { %p1680_p12 = pnand %p1678_p10, %p1675_p8 }
  0x61   : > { %1683 = shalt.err (!%p1680_p12)
}
  0x62   : > { %s1684_s17 = scalar_lea.vmem %s208_s12, 6144  ;;  %p1692_p7 = scmp.lt.s32.totalorder %s208_s12, %s208_s12 }
  0x63   : > { %p1685_p4 = scmp.ne.s32.totalorder %s208_s12, %s1684_s17  ;;  %p1693_p9 = scmp.lt.s32.totalorder %s1684_s17, %s1684_s17 }
  0x65   : > { %p1687_p5 = pnand %p1685_p4, %p2069_p2  ;;  %p1694_p11 = por %p1693_p9, %p1692_p7 }
  0x67   : > { %p1688_p6 = pneg %p1687_p5 }
  0x69   : > { %p1695_p13 = pnand %p1694_p11, %p1688_p6 }
  0x6b   : > { %1698 = shalt.err (!%p1695_p13)
}
  0x6c   : > { %s1924_s2 = smov 128   ;;  %s1925_s21 = smov 8  }
  0x6d   : > { %1498 = dma.hbm_to_vmem [thread:$0]  (!%p2057_p0), %s2337_s1, 6144, %s208_s12, [#allocation5], %s1924_s2, %s1924_s2, %s1925_s21  }
  0x6e   : > { %s1926_s18 = smov [#allocation9]   ;;  %s1927_s14 = smov [#allocation12]  }
  0x6f   : > { %s231_s23 = sshll.u32 %s1926_s18, 4  ;;  %s255_s30 = sshll.u32 %s1927_s14, 4  ;;  %s232_s23 = int_to_ptr.vmem [resolvable:$true] %s231_s23  ;;  %s2124_s30 = int_to_ptr.vmem [resolvable:$true] %s255_s30 }
  0x70   : > { %s1699_s17 = scalar_lea.hbm %s2339_s3, 6144 }
  0x71   : > { %p1700_p1 = scmp.ne.s32.totalorder %s2339_s3, %s1699_s17  ;;  %p1706_p10 = scmp.lt.u32.totalorder %s1699_s17, %s2339_s3 }
  0x73   : > { %p1702_p3 = pnand %p1700_p1, %p2069_p2 }
  0x75   : > { %p1703_p8 = pneg %p1702_p3 }
  0x77   : > { %p1708_p12 = pnand %p1706_p10, %p1703_p8 }
  0x79   : > { %1711 = shalt.err (!%p1708_p12)
}
  0x7a   : > { %s1712_s29 = scalar_lea.vmem %s232_s23, 6144  ;;  %p1720_p7 = scmp.lt.s32.totalorder %s232_s23, %s232_s23 }
  0x7b   : > { %p1713_p4 = scmp.ne.s32.totalorder %s232_s23, %s1712_s29  ;;  %p1721_p9 = scmp.lt.s32.totalorder %s1712_s29, %s1712_s29 }
  0x7d   : > { %p1715_p5 = pnand %p1713_p4, %p2069_p2  ;;  %p1722_p11 = por %p1721_p9, %p1720_p7 }
  0x7f   : > { %p1716_p6 = pneg %p1715_p5 }
  0x81   : > { %p1723_p13 = pnand %p1722_p11, %p1716_p6 }
  0x83   : > { %1726 = shalt.err (!%p1723_p13)
}
  0x84   : > { %1504 = dma.hbm_to_vmem [thread:$0]  (!%p2057_p0), %s2339_s3, 6144, %s232_s23, [#allocation8], %s1924_s2, %s1924_s2, %s1925_s21  }
  0x85   : > { %s1727_s11 = scalar_lea.hbm %s2341_s5, 2048 }
  0x86   : > { %p1728_p1 = scmp.ne.s32.totalorder %s2341_s5, %s1727_s11  ;;  %p1734_p10 = scmp.lt.u32.totalorder %s1727_s11, %s2341_s5 }
  0x88   : > { %p1730_p3 = pnand %p1728_p1, %p2069_p2 }
  0x8a   : > { %p1731_p8 = pneg %p1730_p3 }
  0x8c   : > { %p1736_p12 = pnand %p1734_p10, %p1731_p8 }
  0x8e   : > { %1739 = shalt.err (!%p1736_p12)
}
  0x8f   : > { %s1740_s23 = scalar_lea.vmem %s2124_s30, 2048  ;;  %p1748_p7 = scmp.lt.s32.totalorder %s2124_s30, %s2124_s30 }
  0x90   : > { %p1741_p4 = scmp.ne.s32.totalorder %s2124_s30, %s1740_s23  ;;  %p1749_p9 = scmp.lt.s32.totalorder %s1740_s23, %s1740_s23 }
  0x92   : > { %p1743_p5 = pnand %p1741_p4, %p2069_p2  ;;  %p1750_p11 = por %p1749_p9, %p1748_p7 }
  0x94   : > { %p1744_p6 = pneg %p1743_p5 }
  0x96   : > { %p1751_p13 = pnand %p1750_p11, %p1744_p6 }
  0x98   : > { %1754 = shalt.err (!%p1751_p13)
}
  0x99   : > { %1510 = dma.hbm_to_vmem [thread:$0]  (!%p2057_p0), %s2341_s5, 2048, %s2124_s30, [#allocation11], %s1924_s2, %s1924_s2, %s1925_s21  }
  0x9a   : > { %s1928_s26 = smov [#allocation13]   ;;  %s1755_s10 = scalar_lea.hbm %s2342_s6, 16 }
  0x9b   : > { %s269_s18 = sshll.u32 %s1928_s26, 4  ;;  %p1756_p1 = scmp.ne.s32.totalorder %s2342_s6, %s1755_s10  ;;  %s270_s18 = int_to_ptr.vmem [resolvable:$true] %s269_s18 }
  0x9c   : > { %p1762_p10 = scmp.lt.u32.totalorder %s1755_s10, %s2342_s6 }
  0x9d   : > { %p1758_p3 = pnand %p1756_p1, %p2069_p2 }
  0x9f   : > { %p1759_p8 = pneg %p1758_p3 }
  0xa1   : > { %p1764_p12 = pnand %p1762_p10, %p1759_p8 }
  0xa3   : > { %1767 = shalt.err (!%p1764_p12)
}
  0xa4   : > { %s1768_s2 = scalar_lea.vmem %s270_s18, 16  ;;  %s1775_s21 = scalar_lea.vmem %s270_s18, 32 }
  0xa5   : > { %p1769_p4 = scmp.ne.s32.totalorder %s270_s18, %s1768_s2  ;;  %p1776_p7 = scmp.lt.s32.totalorder %s270_s18, %s270_s18 }
  0xa6   : > { %p1777_p9 = scmp.lt.s32.totalorder %s1775_s21, %s1768_s2 }
  0xa7   : > { %p1771_p5 = pnand %p1769_p4, %p2069_p2 }
  0xa8   : > { %p1778_p11 = por %p1777_p9, %p1776_p7 }
  0xa9   : > { %p1772_p6 = pneg %p1771_p5 }
  0xab   : > { %p1779_p13 = pnand %p1778_p11, %p1772_p6 }
  0xad   : > { %1782 = shalt.err (!%p1779_p13)
}
  0xae   : > { %1513 = dma.hbm_to_vmem [thread:$0]  (!%p2057_p0), %s2342_s6, 16, %s270_s18, [#allocation14]  }
  0xaf   : > { %p2369_p1 = scmp.ne.s32.totalorder %s2362_s19, 0 }
  0xb0   : > { %p2370_p3 = scmp.ne.s32.totalorder (!%p2369_p1), %s2363_s20, 0 }
  0xb1   : > { %282 = sbr.rel (%p2369_p1) target bundleno = 758 (0x2f6), region = 44 }
  0xb8   : > { %1868 = dma.done.wait (%p2370_p3), [#allocation5], 6144  }
  0xb9   : > { %1870 = vsyncadd (%p2370_p3), [#allocation5], 4294961152 }
  0xba   : > { %1872 = dma.done.wait (%p2370_p3), [#allocation8], 6160  }
  0xbb   : > { %1874 = vsyncadd (%p2370_p3), [#allocation8], 4294961136 }
  0xbc   : > { %1876 = dma.done.wait (%p2370_p3), [#allocation11], 2064  }
  0xbd   : > { %1878 = vsyncadd (%p2370_p3), [#allocation11], 4294965232 }
  0xbe   : > { %1880 = dma.done.wait (%p2370_p3), [#allocation14], 16  }
  0xbf   : > { %1882 = vsyncadd (%p2370_p3), [#allocation14], 4294967280  ;;  %s324_s19 = sand.u32 1, %s1895_s25   ;;  %s1077_s22 = sshll.u32 %s1903_s27, 3 }
  0xc0   : > { %s2213_s13 = sshll.u32 %s324_s19, 3  ;;  %s328_s4 = smul.u32 24, %s1907_s28 }
  0xc1   : > { %s1929_s18 = smov [#allocation2]   ;;  %s1785_s2 = scalar_lea.hbm %s2336_s0, 768 }
  0xc2   : > { %s329_s26 = sadd.s32 %s1077_s22, %s328_s4  ;;  %s339_s14 = sshll.u32 %s1929_s18, 4  ;;  %s340_s14 = int_to_ptr.vmem [resolvable:$true] %s339_s14 }
  0xc3   : > { %s1078_s11 = sshll.u32 %s329_s26, 4 }
  0xc4   : > { %s331_s17 = scalar_lea.hbm %s2336_s0, %s1078_s11 }
  0xc5   : > { %s1783_s9 = scalar_lea.hbm %s331_s17, 256  ;;  %p1786_p2 = scmp.lt.u32.totalorder %s331_s17, %s2336_s0 }
  0xc6   : > { %p1784_p0 = scmp.ne.s32.totalorder %s331_s17, %s1783_s9  ;;  %p1787_p8 = scmp.lt.u32.totalorder %s1785_s2, %s1783_s9 }
  0xc7   : > { %p1789_p12 = scmp.lt.u32.totalorder %s1783_s9, %s331_s17 }
  0xc8   : > { %p1788_p10 = por %p1787_p8, %p1786_p2 }
  0xca   : > { %p1790_p4 = por %p1789_p12, %p1788_p10 }
  0xcc   : > { %p1791_p5 = pnand %p1790_p4, %p1784_p0 }
  0xce   : > { %1794 = shalt.err (!%p1791_p5)  }
  0xcf   : > { %s1795_s29 = scalar_lea.vmem %s340_s14, 256  ;;  %p1800_p7 = scmp.lt.s32.totalorder %s340_s14, %s340_s14 }
  0xd0   : > { %p1796_p6 = scmp.ne.s32.totalorder %s340_s14, %s1795_s29  ;;  %p1801_p9 = scmp.lt.s32.totalorder %s1795_s29, %s1795_s29 }
  0xd2   : > { %p1802_p11 = por %p1801_p9, %p1800_p7 }
  0xd4   : > { %p1803_p13 = pnand %p1802_p11, %p1796_p6 }
  0xd6   : > { %1806 = shalt.err (!%p1803_p13)  }
  0xd7   : > { %342 = dma.hbm_to_vmem [thread:$0]  %s331_s17, 256, %s340_s14, [#allocation3] }
  0xd8   : > { %s326_s4 = scalar_lea.vmem [#allocation15], %s2213_s13 }
  0xd9   : > { %1883 = dma.done.wait [#allocation3], 256 }
  0xda   : > { %1884 = vsyncadd [#allocation3], 4294967040  ;;  %v1930_v0 = vmov 0.0|0.0   ;;  %vm1931_vm0 = vmmov 0   ;;  %v1932_v1 = vmov 0.0   ;;  %v348_v2 = vld [vmem:[#allocation12] sm:$0xff] }
  0xdb   : > { %1321 = vmatprep.subr.bf16.mxu0 %v1930_v0  ;;  %1248 = vmatprep.mubr.msk.f32.mxu0 %vm1931_vm0, %v1932_v1  ;;  %v349_v3 = vld [vmem:[#allocation12 + $0x8] sm:$0xff]  ;;  %v350_v4 = vld [vmem:[#allocation12 + $0x10] sm:$0xff]  ;;  %v351_v6 = vld [vmem:[#allocation12 + $0x18] sm:$0xff]  ;;  %vm373_vm1 = vcmask 1043456   ;;  %vm461_vm2 = vcmask 1045504   ;;  %s1081_s26 = sadd.s32 4294967294, %s1077_s22 }
  0xdc   : > { %v1322_v5 = vpack.c.bf16 %v349_v3, %v348_v2  ;;  %v1325_v7 = vpack.c.bf16 %v351_v6, %v350_v4  ;;  %v352_v8 = vld [vmem:[#allocation12 + $0x20] sm:$0xff]  ;;  %v353_v9 = vld [vmem:[#allocation12 + $0x28] sm:$0xff]  ;;  %v491_v17 = vld [vmem:[#allocation4 + $0x98] sm:$0xff]  ;;  %s1086_s22 = sshll.u32 %s1907_s28, 1  ;;  %s929_s11 = sshll.u32 %s326_s4, 4  ;;  %s2281_s11 = int_to_ptr.vmem [resolvable:$true] %s929_s11 }
  0xdd   : > { %v488_v10 = vld [vmem:[#allocation4 + $0x80] sm:$0xff]  ;;  %v489_v11 = vld [vmem:[#allocation4 + $0x88] sm:$0xff]  ;;  %v490_v16 = vld [vmem:[#allocation4 + $0x90] sm:$0xff]  ;;  %v1328_v19 = vpack.c.bf16 %v353_v9, %v352_v8  ;;  %s925_s18 = sadd.s32 %s1903_s27, %s1086_s22  ;;  %s914_s27 = scalar_lea.sflag [#allocation6], %s324_s19 }
  0xde   : > { %1323 = vmatpush3.bf16.msra.mxu0 %v1322_v5  ;;  %v472_v12 = vld [vmem:[#allocation4] sm:$0xff]  ;;  %v1345_v13 = vpack.c.bf16 %v489_v11, %v488_v10  ;;  %v473_v14 = vld [vmem:[#allocation4 + $0x8] sm:$0xff]  ;;  %v474_v18 = vld [vmem:[#allocation4 + $0x10] sm:$0xff]  ;;  %v1349_v21 = vpack.c.bf16 %v491_v17, %v490_v16  ;;  %s1087_s14 = sshll.u32 %s925_s18, 7  ;;  %s1807_s28 = scalar_lea.vmem %s2281_s11, 128 }
  0xdf   : > { %1324 = vmatprep.subr.bf16.mxu0 %v1930_v0  ;;  %v1347_v15 = vpack.c.bf16 %v473_v14, %v472_v12  ;;  %v354_v20 = vld [vmem:[#allocation12 + $0x30] sm:$0xff]  ;;  %v355_v23 = vld [vmem:[#allocation12 + $0x38] sm:$0xff]  ;;  %v493_v26 = vld [vmem:[#allocation4 + $0xa8] sm:$0xff]  ;;  %s2279_s17 = scalar_lea.hbm %s2343_s7, %s1087_s14  ;;  %p1808_p1 = scmp.ne.s32.totalorder %s2281_s11, %s1807_s28 }
  0xe0   : > { %1346 = vmatprep.subr.bf16.mxu1 %v1345_v13  ;;  %v475_v22 = vld [vmem:[#allocation4 + $0x18] sm:$0xff]  ;;  %v492_v25 = vld [vmem:[#allocation4 + $0xa0] sm:$0xff]  ;;  %v477_v29 = vld [vmem:[#allocation4 + $0x28] sm:$0xff]  ;;  %v1331_v33 = vpack.c.bf16 %v355_v23, %v354_v20  ;;  %p2371_p3 = scmp.ne.s32.totalorder %s2359_s15, 0  ;;  %s1933_s9 = smov [#allocation15]  }
  0xe1   : > { %1348 = vmatpush3.bf16.msra.mxu1 %v1347_v15  ;;  %v1351_v24 = vpack.c.bf16 %v475_v22, %v474_v18  ;;  %v1353_v27 = vpack.c.bf16 %v493_v26, %v492_v25  ;;  %v476_v28 = vld [vmem:[#allocation4 + $0x20] sm:$0xff]  ;;  %v2233_v30 = vld [vmem:[#allocation2] sm:$0xff]  ;;  %v2235_v31 = vld [vmem:[#allocation2 + $0x8] sm:$0xff]  ;;  %s1811_s12 = sshll.u32 %s1933_s9, 4  ;;  %s1812_s12 = int_to_ptr.vmem [resolvable:$false] %s1811_s12 }
  0xe2   : > { %1326 = vmatpush3.bf16.msra.mxu0 %v1325_v7  ;;  %1350 = vmatprep.subr.bf16.mxu1 %v1349_v21  ;;  %v494_v32 = vld [vmem:[#allocation4 + $0xb0] sm:$0xff]  ;;  %v451_v34 = vmul.f32 0.70710677, %v2233_v30  ;;  %v452_v35 = vmul.f32 0.70710677, %v2235_v31  ;;  %v356_v36 = vld [vmem:[#allocation12 + $0x40] sm:$0xff]  ;;  %v1355_v38 = vpack.c.bf16 %v477_v29, %v476_v28  ;;  %p1809_p0 = pnand %p1808_p1, %p2371_p3  ;;  %p1814_p8 = scmp.lt.s32.totalorder %s2281_s11, %s1812_s12 }
  0xe3   : > { %1327 = vmatprep.subr.bf16.mxu0 %v1930_v0  ;;  %v357_v37 = vld [vmem:[#allocation12 + $0x48] sm:$0xff]  ;;  %v495_v39 = vld [vmem:[#allocation4 + $0xb8] sm:$0xff]  ;;  %v496_v43 = vld [vmem:[#allocation4 + $0xc0] sm:$0xff]  ;;  %v448_v63 = vmul.f32 0.5, %v2233_v30  ;;  %v449_v4 = vmul.f32 0.5, %v2235_v31  ;;  %v374_v20 = vrot.slane %v2233_v30, 4 }
  0xe4   : > { %1607 = verf.f32 %v451_v34  ;;  %v1357_v40 = vpack.c.bf16 %v495_v39, %v494_v32  ;;  %v478_v41 = vld [vmem:[#allocation4 + $0x30] sm:$0xff]  ;;  %v479_v42 = vld [vmem:[#allocation4 + $0x38] sm:$0xff]  ;;  %v497_v44 = vld [vmem:[#allocation4 + $0xc8] sm:$0xff]  ;;  %v1334_v45 = vpack.c.bf16 %v357_v37, %v356_v36  ;;  %v375_v21 = vrot.slane %v2235_v31, 4  ;;  %p1810_p2 = pneg %p1809_p0  ;;  %s1813_s23 = scalar_lea.vmem %s1812_s12, 256 }
  0xe5   : > { %1352 = vmatpush3.bf16.msra.mxu1 %v1351_v24  ;;  %1609 = verf.f32 %v452_v35  ;;  %v358_v46 = vld [vmem:[#allocation12 + $0x50] sm:$0xff]  ;;  %v359_v47 = vld [vmem:[#allocation12 + $0x58] sm:$0xff]  ;;  %v1359_v48 = vpack.c.bf16 %v479_v42, %v478_v41  ;;  %v1361_v49 = vpack.c.bf16 %v497_v44, %v496_v43  ;;  %v481_v51 = vld [vmem:[#allocation4 + $0x48] sm:$0xff]  ;;  %p1815_p10 = scmp.lt.s32.totalorder %s1813_s23, %s1807_s28 }
  0xe6   : > { %1329 = vmatpush3.bf16.msra.mxu0 %v1328_v19  ;;  %1354 = vmatprep.subr.bf16.mxu1 %v1353_v27  ;;  %v480_v50 = vld [vmem:[#allocation4 + $0x40] sm:$0xff]  ;;  %v498_v52 = vld [vmem:[#allocation4 + $0xd0] sm:$0xff]  ;;  %v499_v53 = vld [vmem:[#allocation4 + $0xd8] sm:$0xff]  ;;  %v1337_v54 = vpack.c.bf16 %v359_v47, %v358_v46  ;;  %v376_v31 = vsel %vm373_vm1, %v374_v20, %v375_v21 }
  0xe7   : > { %1330 = vmatprep.subr.bf16.mxu0 %v1930_v0  ;;  %v360_v55 = vld [vmem:[#allocation12 + $0x60] sm:$0xff]  ;;  %v361_v56 = vld [vmem:[#allocation12 + $0x68] sm:$0xff]  ;;  %v1363_v57 = vpack.c.bf16 %v481_v51, %v480_v50  ;;  %v1365_v58 = vpack.c.bf16 %v499_v53, %v498_v52  ;;  %v483_v60 = vld [vmem:[#allocation4 + $0x58] sm:$0xff]  ;;  %p1816_p12 = por %p1815_p10, %p1814_p8 }
  0xe8   : > { %v482_v59 = vld [vmem:[#allocation4 + $0x50] sm:$0xff]  ;;  %v500_v61 = vld [vmem:[#allocation4 + $0xe0] sm:$0xff]  ;;  %v501_v62 = vld [vmem:[#allocation4 + $0xe8] sm:$0xff]  ;;  %v1340_v3 = vpack.c.bf16 %v361_v56, %v360_v55 }
  0xe9   : > { %1356 = vmatpush3.bf16.msra.mxu1 %v1355_v38  ;;  %v362_v6 = vld [vmem:[#allocation12 + $0x70] sm:$0xff]  ;;  %v363_v7 = vld [vmem:[#allocation12 + $0x78] sm:$0xff]  ;;  %v1367_v9 = vpack.c.bf16 %v483_v60, %v482_v59  ;;  %v505_v11 = vld [vmem:[#allocation4 + $0x108] sm:$0xff]  ;;  %v1369_v12 = vpack.c.bf16 %v501_v62, %v500_v61  ;;  %p1817_p4 = pnand %p1816_p12, %p1810_p2 }
  0xea   : > { %1332 = vmatpush3.bf16.msra.mxu0 %v1331_v33  ;;  %1358 = vmatprep.subr.bf16.mxu1 %v1357_v40  ;;  %v504_v8 = vld [vmem:[#allocation4 + $0x100] sm:$0xff]  ;;  %v485_v14 = vld [vmem:[#allocation4 + $0x68] sm:$0xff]  ;;  %v502_v16 = vld [vmem:[#allocation4 + $0xf0] sm:$0xff]  ;;  %v1343_v19 = vpack.c.bf16 %v363_v7, %v362_v6 }
  0xeb   : > { %1333 = vmatprep.subr.bf16.mxu0 %v1930_v0  ;;  %v484_v13 = vld [vmem:[#allocation4 + $0x60] sm:$0xff]  ;;  %v503_v17 = vld [vmem:[#allocation4 + $0xf8] sm:$0xff]  ;;  %v1377_v23 = vpack.c.bf16 %v505_v11, %v504_v8  ;;  %v506_v24 = vld [vmem:[#allocation4 + $0x110] sm:$0xff] }
  0xec   : > { %v1371_v25 = vpack.c.bf16 %v485_v14, %v484_v13  ;;  %v507_v28 = vld [vmem:[#allocation4 + $0x118] sm:$0xff]  ;;  %v1373_v29 = vpack.c.bf16 %v503_v17, %v502_v16  ;;  %v486_v32 = vld [vmem:[#allocation4 + $0x70] sm:$0xff]  ;;  %v508_v39 = vld [vmem:[#allocation4 + $0x120] sm:$0xff] }
  0xed   : > { %1360 = vmatpush3.bf16.msra.mxu1 %v1359_v48  ;;  %v487_v33 = vld [vmem:[#allocation4 + $0x78] sm:$0xff]  ;;  %v1381_v36 = vpack.c.bf16 %v507_v28, %v506_v24  ;;  %v509_v40 = vld [vmem:[#allocation4 + $0x128] sm:$0xff]  ;;  %v510_v42 = vld [vmem:[#allocation4 + $0x130] sm:$0xff] }
  0xee   : > { %1335 = vmatpush3.bf16.msra.mxu0 %v1334_v45  ;;  %1362 = vmatprep.subr.bf16.mxu1 %v1361_v49  ;;  %v1608_v2 = vpop.eup %1607  ;;  %v1375_v37 = vpack.c.bf16 %v487_v33, %v486_v32  ;;  %v1385_v41 = vpack.c.bf16 %v509_v40, %v508_v39  ;;  %v511_v43 = vld [vmem:[#allocation4 + $0x138] sm:$0xff]  ;;  %v512_v45 = vld [vmem:[#allocation4 + $0x140] sm:$0xff]  ;;  %v513_v46 = vld [vmem:[#allocation4 + $0x148] sm:$0xff] }
  0xef   : > { %1336 = vmatprep.subr.bf16.mxu0 %v1930_v0  ;;  %v1610_v5 = vpop.eup %1609  ;;  %v455_v10 = vadd.f32 1.0, %v1608_v2  ;;  %v1389_v44 = vpack.c.bf16 %v511_v43, %v510_v42  ;;  %v1393_v47 = vpack.c.bf16 %v513_v46, %v512_v45  ;;  %v514_v48 = vld [vmem:[#allocation4 + $0x150] sm:$0xff]  ;;  %v515_v49 = vld [vmem:[#allocation4 + $0x158] sm:$0xff]  ;;  %v516_v51 = vld [vmem:[#allocation4 + $0x160] sm:$0xff] }
  0xf0   : > { %v456_v15 = vadd.f32 1.0, %v1610_v5  ;;  %v1397_v50 = vpack.c.bf16 %v515_v49, %v514_v48  ;;  %v517_v52 = vld [vmem:[#allocation4 + $0x168] sm:$0xff]  ;;  %v519_v55 = vld [vmem:[#allocation4 + $0x178] sm:$0xff] }
  0xf1   : > { %1364 = vmatpush3.bf16.msra.mxu1 %v1363_v57  ;;  %v457_v18 = vmul.f32 %v455_v10, %v448_v63  ;;  %v1401_v53 = vpack.c.bf16 %v517_v52, %v516_v51  ;;  %v732_v57 = vld [vmem:[#allocation9 + $0x80] sm:$0xff]  ;;  %v749_v61 = vld [vmem:[#allocation9 + $0x108] sm:$0xff]  ;;  %v735_v5 = vld [vmem:[#allocation9 + $0x98] sm:$0xff] }
  0xf2   : > { %1338 = vmatpush3.bf16.msra.mxu0 %v1337_v54  ;;  %1366 = vmatprep.subr.bf16.mxu1 %v1365_v58  ;;  %v2247_v22 = vmul.f32 %v456_v15, %v449_v4  ;;  %v518_v54 = vld [vmem:[#allocation4 + $0x170] sm:$0xff]  ;;  %v748_v59 = vld [vmem:[#allocation9 + $0x100] sm:$0xff]  ;;  %v751_v7 = vld [vmem:[#allocation9 + $0x118] sm:$0xff] }
  0xf3   : > { %1339 = vmatprep.subr.bf16.mxu0 %v1930_v0  ;;  %v462_v26 = vrot.slane %v457_v18, 2  ;;  %v467_v27 = vrot.slane %v457_v18, 4  ;;  %v1405_v56 = vpack.c.bf16 %v519_v55, %v518_v54  ;;  %v733_v58 = vld [vmem:[#allocation9 + $0x88] sm:$0xff]  ;;  %v1442_v62 = vpack.c.bf16 %v749_v61, %v748_v59  ;;  %v716_v63 = vld [vmem:[#allocation9] sm:$0xff]  ;;  %v750_v6 = vld [vmem:[#allocation9 + $0x110] sm:$0xff] }
  0xf4   : > { %v463_v34 = vrot.slane %v2247_v22, 2  ;;  %v468_v30 = vrot.slane %v2247_v22, 4  ;;  %v1409_v60 = vpack.c.bf16 %v733_v58, %v732_v57  ;;  %v717_v2 = vld [vmem:[#allocation9 + $0x8] sm:$0xff]  ;;  %v718_v10 = vld [vmem:[#allocation9 + $0x10] sm:$0xff]  ;;  %v719_v11 = vld [vmem:[#allocation9 + $0x18] sm:$0xff] }
  0xf5   : > { %1368 = vmatpush3.bf16.msra.mxu1 %v1367_v9  ;;  %v1411_v4 = vpack.c.bf16 %v717_v2, %v716_v63  ;;  %v1445_v9 = vpack.c.bf16 %v751_v7, %v750_v6  ;;  %v736_v13 = vld [vmem:[#allocation9 + $0xa0] sm:$0xff]  ;;  %v737_v14 = vld [vmem:[#allocation9 + $0xa8] sm:$0xff]  ;;  %v754_v24 = vld [vmem:[#allocation9 + $0x130] sm:$0xff] }
  0xf6   : > { %1341 = vmatpush3.bf16.msra.mxu0 %v1340_v3  ;;  %1370 = vmatprep.subr.bf16.mxu1 %v1369_v12  ;;  %v464_v35 = vsel %vm461_vm2, %v462_v26, %v463_v34  ;;  %v469_v38 = vsel %vm373_vm1, %v467_v27, %v468_v30  ;;  %v734_v3 = vld [vmem:[#allocation9 + $0x90] sm:$0xff]  ;;  %v1415_v12 = vpack.c.bf16 %v719_v11, %v718_v10  ;;  %v752_v15 = vld [vmem:[#allocation9 + $0x120] sm:$0xff]  ;;  %v753_v17 = vld [vmem:[#allocation9 + $0x128] sm:$0xff]  ;;  %v677_v11 = vlaneseq }
  0xf7   : > { %1342 = vmatprep.subr.bf16.mxu0 %v1930_v0  ;;  %591 = vmatprep.mubr.f32.mxu1 %v464_v35  ;;  %v1413_v8 = vpack.c.bf16 %v735_v5, %v734_v3  ;;  %v1417_v16 = vpack.c.bf16 %v737_v14, %v736_v13  ;;  %v1448_v20 = vpack.c.bf16 %v753_v17, %v752_v15  ;;  %v755_v26 = vld [vmem:[#allocation9 + $0x138] sm:$0xff]  ;;  %v722_v27 = vld [vmem:[#allocation9 + $0x30] sm:$0xff]  ;;  %v740_v33 = vld [vmem:[#allocation9 + $0xc0] sm:$0xff] }
  0xf8   : > { %v723_v28 = vld [vmem:[#allocation9 + $0x38] sm:$0xff]  ;;  %v757_v35 = vld [vmem:[#allocation9 + $0x148] sm:$0xff]  ;;  %v742_v40 = vld [vmem:[#allocation9 + $0xd0] sm:$0xff] }
  0xf9   : > { %1372 = vmatpush3.bf16.msra.mxu1 %v1371_v25  ;;  %v1423_v32 = vpack.c.bf16 %v723_v28, %v722_v27  ;;  %v758_v42 = vld [vmem:[#allocation9 + $0x150] sm:$0xff]  ;;  %v727_v46 = vld [vmem:[#allocation9 + $0x58] sm:$0xff]  ;;  %v744_v49 = vld [vmem:[#allocation9 + $0xe0] sm:$0xff] }
  0xfa   : > { %1344 = vmatpush3.bf16.msra.mxu0 %v1343_v19  ;;  %1374 = vmatprep.subr.bf16.mxu1 %v1373_v29  ;;  %v721_v19 = vld [vmem:[#allocation9 + $0x28] sm:$0xff]  ;;  %v1451_v29 = vpack.c.bf16 %v755_v26, %v754_v24  ;;  %v726_v45 = vld [vmem:[#allocation9 + $0x50] sm:$0xff]  ;;  %v760_v51 = vld [vmem:[#allocation9 + $0x160] sm:$0xff] }
  0xfb   : > { %1378 = vmatprep.subr.bf16.mxu0 %v1377_v23  ;;  %v1431_v48 = vpack.c.bf16 %v727_v46, %v726_v45  ;;  %v728_v54 = vld [vmem:[#allocation9 + $0x60] sm:$0xff]  ;;  %v729_v55 = vld [vmem:[#allocation9 + $0x68] sm:$0xff]  ;;  %v746_v58 = vld [vmem:[#allocation9 + $0xf0] sm:$0xff] }
  0xfc   : > { %v1435_v57 = vpack.c.bf16 %v729_v55, %v728_v54  ;;  %v747_v59 = vld [vmem:[#allocation9 + $0xf8] sm:$0xff]  ;;  %v730_v63 = vld [vmem:[#allocation9 + $0x70] sm:$0xff]  ;;  %v1084_v45 = vld [vmem:[#allocation10] ss:$0 sm:$0xff] }
  0xfd   : > { %1249 = vmatmul.mubr.f32.vlgmr.msra.gmra.mrb[0].mxu0 %v376_v31  ;;  %1376 = vmatpush3.bf16.msra.mxu1 %v1375_v37  ;;  %v725_v37 = vld [vmem:[#allocation9 + $0x48] sm:$0xff]  ;;  %v1437_v61 = vpack.c.bf16 %v747_v59, %v746_v58  ;;  %v731_v2 = vld [vmem:[#allocation9 + $0x78] sm:$0xff] }
  0xfe   : > { %1380 = vmatpush3.bf16.msra.mxu0 %v1377_v23  ;;  %1283 = vmatprep.mubr.f32.mxu0 %v469_v38  ;;  %v739_v23 = vld [vmem:[#allocation9 + $0xb8] sm:$0xff] }
  0xff   : > { %1382 = vmatprep.subr.bf16.mxu0 %v1381_v36  ;;  %1410 = vmatprep.subr.bf16.mxu1 %v1409_v60  ;;  %v762_v60 = vld [vmem:[#allocation9 + $0x170] sm:$0xff] }
 0x100   : > { %592 = vmatmul.mubr.f32.vlgmr.msra.gmra.mrb[0].mxu1 %v457_v18  ;;  %v720_v18 = vld [vmem:[#allocation9 + $0x20] sm:$0xff] }
 0x101   : > { %596 = vmatprep.mubr.f32.mxu1 %v463_v34  ;;  %1412 = vmatpush3.bf16.msra.mxu1 %v1411_v4  ;;  %v1419_v21 = vpack.c.bf16 %v721_v19, %v720_v18  ;;  %v741_v34 = vld [vmem:[#allocation9 + $0xc8] sm:$0xff]  ;;  %v1439_v4 = vpack.c.bf16 %v731_v2, %v730_v63 }
 0x102   : > { %1384 = vmatpush3.bf16.msra.mxu0 %v1381_v36  ;;  %1414 = vmatprep.subr.bf16.mxu1 %v1413_v8  ;;  %v1425_v31 = vpack.c.bf16 %v741_v34, %v740_v33  ;;  %v724_v36 = vld [vmem:[#allocation9 + $0x40] sm:$0xff] }
 0x103   : > { %1386 = vmatprep.subr.bf16.mxu0 %v1385_v41  ;;  %v1427_v39 = vpack.c.bf16 %v725_v37, %v724_v36 }
 0x104   : > { %597 = vmatmul.mubr.f32.gmra.mrb[2].mxu1 %v2247_v22  ;;  %v738_v22 = vld [vmem:[#allocation9 + $0xb0] sm:$0xff] }
 0x105   : > { %1416 = vmatpush3.bf16.msra.mxu1 %v1415_v12  ;;  %v1421_v25 = vpack.c.bf16 %v739_v23, %v738_v22  ;;  %v1080_v12 = vld [vmem:[#allocation7] ss:$0 sm:$0xff] }
 0x106   : > { %1388 = vmatpush3.bf16.msra.mxu0 %v1385_v41  ;;  %1418 = vmatprep.subr.bf16.mxu1 %v1417_v16  ;;  %v743_v41 = vld [vmem:[#allocation9 + $0xd8] sm:$0xff] }
 0x107   : > { %1390 = vmatprep.subr.bf16.mxu0 %v1389_v44  ;;  %v1429_v43 = vpack.c.bf16 %v743_v41, %v742_v40 }
 0x109   : > { %1420 = vmatpush3.bf16.msra.mxu1 %v1419_v21  ;;  %v681_v21 = vstv %s1081_s26 }
 0x10a   : > { %1392 = vmatpush3.bf16.msra.mxu0 %v1389_v44  ;;  %1422 = vmatprep.subr.bf16.mxu1 %v1421_v25  ;;  %v759_v44 = vld [vmem:[#allocation9 + $0x158] sm:$0xff] }
 0x10b   : > { %1394 = vmatprep.subr.bf16.mxu0 %v1393_v47 }
 0x10d   : > { %1424 = vmatpush3.bf16.msra.mxu1 %v1423_v32 }
 0x10e   : > { %1396 = vmatpush3.bf16.msra.mxu0 %v1393_v47  ;;  %1426 = vmatprep.subr.bf16.mxu1 %v1425_v31  ;;  %v1457_v47 = vpack.c.bf16 %v759_v44, %v758_v42 }
 0x10f   : > { %1398 = vmatprep.subr.bf16.mxu0 %v1397_v50 }
 0x111   : > { %1428 = vmatpush3.bf16.msra.mxu1 %v1427_v39 }
 0x112   : > { %1400 = vmatpush3.bf16.msra.mxu0 %v1397_v50  ;;  %1430 = vmatprep.subr.bf16.mxu1 %v1429_v43  ;;  %v745_v50 = vld [vmem:[#allocation9 + $0xe8] sm:$0xff] }
 0x113   : > { %1402 = vmatprep.subr.bf16.mxu0 %v1401_v53  ;;  %v1433_v52 = vpack.c.bf16 %v745_v50, %v744_v49 }
 0x115   : > { %1432 = vmatpush3.bf16.msra.mxu1 %v1431_v48  ;;  %v1079_v48 = vld [vmem:[#allocation13] ss:$0 sm:$0xff] }
 0x116   : > { %1404 = vmatpush3.bf16.msra.mxu0 %v1401_v53  ;;  %v761_v53 = vld [vmem:[#allocation9 + $0x168] sm:$0xff]  ;;  %1434 = vmatprep.subr.bf16.mxu1 %v1433_v52 }
 0x117   : > { %1406 = vmatprep.subr.bf16.mxu0 %v1405_v56 }
 0x119   : > { %1436 = vmatpush3.bf16.msra.mxu1 %v1435_v57 }
 0x11a   : > { %1408 = vmatpush3.bf16.msra.mxu0 %v1405_v56  ;;  %v1460_v56 = vpack.c.bf16 %v761_v53, %v760_v51  ;;  %1438 = vmatprep.subr.bf16.mxu1 %v1437_v61 }
 0x11b   : > { %1441 = vmatprep.subr.bf16.mxu0 %v1930_v0 }
 0x11d   : > { %1284 = vmatmul.mubr.f32.vlgmr.msra.gmra.mrb[2].mxu0 %v468_v30  ;;  %v756_v30 = vld [vmem:[#allocation9 + $0x140] sm:$0xff]  ;;  %1440 = vmatpush3.bf16.msra.mxu1 %v1439_v4 }
 0x11e   : > { %1318 = vmatprep.mubr.msk.f32.mxu0 %vm1931_vm0, %v1932_v1  ;;  %1443 = vmatpush3.bf16.msra.mxu0 %v1442_v62  ;;  %v1454_v38 = vpack.c.bf16 %v757_v35, %v756_v30  ;;  %v763_v62 = vld [vmem:[#allocation9 + $0x178] sm:$0xff] }
 0x11f   : > { %1444 = vmatprep.subr.bf16.mxu0 %v1930_v0  ;;  %v1463_v3 = vpack.c.bf16 %v763_v62, %v762_v60 }
 0x122   : > { %1446 = vmatpush3.bf16.msra.mxu0 %v1445_v9 }
 0x123   : > { %1447 = vmatprep.subr.bf16.mxu0 %v1930_v0 }
 0x126   : > { %1449 = vmatpush3.bf16.msra.mxu0 %v1448_v20 }
 0x127   : > { %1450 = vmatprep.subr.bf16.mxu0 %v1930_v0 }
 0x12a   : > { %1452 = vmatpush3.bf16.msra.mxu0 %v1451_v29 }
 0x12b   : > { %1453 = vmatprep.subr.bf16.mxu0 %v1930_v0 }
 0x12e   : > { %1455 = vmatpush3.bf16.msra.mxu0 %v1454_v38 }
 0x12f   : > { %1456 = vmatprep.subr.bf16.mxu0 %v1930_v0 }
 0x132   : > { %1458 = vmatpush3.bf16.msra.mxu0 %v1457_v47 }
 0x133   : > { %1459 = vmatprep.subr.bf16.mxu0 %v1930_v0 }
 0x136   : > { %1461 = vmatpush3.bf16.msra.mxu0 %v1460_v56 }
 0x137   : > { %1462 = vmatprep.subr.bf16.mxu0 %v1930_v0  ;;  %v678_v0 = vshrl.u32 %v677_v11, 7 }
 0x139   : > { %v679_v19 = vadd.s32 8, %v678_v0  ;;  %v682_v24 = vadd.s32 %v681_v21, %v678_v0 }
 0x13a   : > { %1464 = vmatpush3.bf16.msra.mxu0 %v1463_v3 }
 0x13b   : > { %v683_v23 = vadd.s32 %v681_v21, %v679_v19  ;;  %vm684_vm5 = vcmp.ge.s32.totalorder %v682_v24, 0  ;;  %vm686_vm6 = vcmp.lt.s32.totalorder %v682_v24, 16 }
 0x13c   : > { %vm688_vm8 = vmand %vm684_vm5, %vm686_vm6 }
 0x13d   : > { %vm685_vm3 = vcmp.ge.s32.totalorder %v683_v23, 0  ;;  %vm687_vm4 = vcmp.lt.s32.totalorder %v683_v23, 16  ;;  %v1082_v30 = vsel %vm688_vm8, 1.0, %v1932_v1 }
 0x13e   : > { %vm689_vm7 = vmand %vm685_vm3, %vm687_vm4 }
 0x13f   : > { %v1083_v29 = vsel %vm689_vm7, 1.0, %v1932_v1 }
 0x1d3   : > { %v1140_v5 = vpop.f32.mrb[0].mxu1 }
 0x1d4   : > { %v1141_v6 = vpop.f32.mrb[1].mxu1 }
 0x1d5   : > { %v1142_v7 = vadd.f32 %v1141_v6, %v1140_v5 }
 0x1d7   : > { %v1143_v8 = vpop.f32.mrb[2].mxu1  ;;  %v594_v15 = vadd.f32 %v1142_v7, %v1080_v12 }
 0x1d8   : > { %v1144_v9 = vpop.f32.mrb[3].mxu1 }
 0x1d9   : > { %v1145_v10 = vadd.f32 %v1144_v9, %v1143_v8 }
 0x1db   : > { %v599_v13 = vadd.f32 %v1145_v10, %v1080_v12 }
 0x1f0   : > { %v1285_v14 = vpop.f32.mrb[2].mxu0 }
 0x1f1   : > { %v674_v16 = vadd.f32 %v1285_v14, %v599_v13  ;;  %v668_v17 = vpop.f32.mrb[3].mxu0 }
 0x1f2   : > { %v669_v18 = vadd.f32 %v668_v17, %v594_v15 }
 0x1f3   : > { %v697_v20 = vmul.f32 0.70710677, %v674_v16  ;;  %v695_v27 = vmul.f32 0.5, %v674_v16 }
 0x1f4   : > { %v696_v22 = vmul.f32 0.70710677, %v669_v18  ;;  %v694_v32 = vmul.f32 0.5, %v669_v18 }
 0x1f5   : > { %1611 = verf.f32 %v697_v20 }
 0x1f6   : > { %1613 = verf.f32 %v696_v22 }
 0x1ff   : > { %v1612_v25 = vpop.eup %1611 }
 0x200   : > { %v1614_v26 = vpop.eup %1613  ;;  %v701_v28 = vadd.f32 1.0, %v1612_v25 }
 0x201   : > { %v700_v33 = vadd.f32 1.0, %v1614_v26 }
 0x202   : > { %v703_v34 = vmul.f32 %v701_v28, %v695_v27 }
 0x203   : > { %v702_v31 = vmul.f32 %v700_v33, %v694_v32 }
 0x204   : > { %v705_v35 = vmul.f32 %v1083_v29, %v703_v34 }
 0x205   : > { %v704_v36 = vmul.f32 %v1082_v30, %v702_v31 }
 0x206   : > { %v709_v37 = vrot.slane %v705_v35, 2  ;;  %v713_v38 = vrot.slane %v705_v35, 4 }
 0x207   : > { %v708_v39 = vrot.slane %v704_v36, 2  ;;  %v712_v40 = vrot.slane %v704_v36, 4 }
 0x209   : > { %v710_v41 = vsel %vm461_vm2, %v708_v39, %v709_v37  ;;  %v714_v42 = vsel %vm373_vm1, %v712_v40, %v713_v38 }
 0x20a   : > { %835 = vmatprep.mubr.f32.mxu1 %v710_v41  ;;  %1319 = vmatmul.mubr.f32.vlgmr.msra.gmra.mrb[0].mxu0 %v714_v42 }
 0x20b   : > { %836 = vmatmul.mubr.f32.vlgmr.msra.gmra.mrb[4].mxu1 %v704_v36 }
 0x2dd   : > { %v907_v43 = vpop.f32.mrb[0].mxu0 }
 0x2de   : > { %v1196_v1 = vpop.f32.mrb[4].mxu1  ;;  %v1320_v44 = vpop.f32.mrb[1].mxu0 }
 0x2df   : > { %v1197_v46 = vpop.f32.mrb[5].mxu1 }
 0x2e0   : > { %v1198_v47 = vadd.f32 %v1197_v46, %v1196_v1 }
 0x2e2   : > { %v838_v49 = vadd.f32 %v1198_v47, %v1084_v45 }
 0x2e4   : > { %v1465_v50 = vadd.f32 %v1079_v48, %v838_v49 }
 0x2e6   : > { %v1466_v51 = vadd.f32 %v1465_v50, %v907_v43 }
 0x2e8   : > { %912 = vst [vmem:[%s326_s4] sm:$0xff] %v1466_v51 }
 0x2e9   : > { %1820 = shalt.err (!%p1817_p4)
}
 0x2ea   : > { %s1821_s19 = scalar_lea.hbm %s2279_s17, 128  ;;  %s1825_s21 = scalar_lea.hbm %s2343_s7, 512 }
 0x2eb   : > { %p1822_p5 = scmp.ne.s32.totalorder %s2279_s17, %s1821_s19  ;;  %p1826_p9 = scmp.lt.u32.totalorder %s2279_s17, %s2343_s7 }
 0x2ec   : > { %p1827_p11 = scmp.lt.u32.totalorder %s1825_s21, %s1821_s19  ;;  %p1829_p1 = scmp.lt.u32.totalorder %s1821_s19, %s2279_s17 }
 0x2ed   : > { %p1823_p6 = pnand %p1822_p5, %p2371_p3 }
 0x2ee   : > { %p1828_p13 = por %p1827_p11, %p1826_p9 }
 0x2ef   : > { %p1824_p7 = pneg %p1823_p6 }
 0x2f0   : > { %p1830_p0 = por %p1829_p1, %p1828_p13 }
 0x2f2   : > { %p1831_p2 = pnand %p1830_p0, %p1824_p7 }
 0x2f4   : > { %1834 = shalt.err (!%p1831_p2)
}
 0x2f5   : > { %1493 = dma.vmem_to_hbm [thread:$0]  (%p2371_p3), %s2281_s11, 128, %s2279_s17, %s914_s27  }
 0x2f6 PF: > { %p1530_p8 = scmp.ge.s32.totalorder %s1919_s8, 2  ;;  %s941_s4 = sand.u32 1, %s1891_s24  }
 0x2f7   : > { %p2372_p10 = scmp.ne.s32.totalorder %s2361_s16, 0  ;;  %s942_s26 = scalar_lea.sflag [#allocation6], %s941_s4 }
 0x2f9   : > { %p1515_p12 = pnand %p1530_p8, %p2372_p10 }
 0x2fb   : > { %1886 = dma.done.wait (!%p1515_p12), %s942_s26, 128  }
 0x2fc   : > { %1888 = vsyncadd (!%p1515_p12), %s942_s26, 4294967168  ;;  %s24_s8 = sadd.s32 1, %s1919_s8   ;;  %s2373_s22 = sld [smem:[#allocation26_spill]] }
 0x2fd   : > { %p21_p4 = scmp.ge.s32.totalorder %s24_s8, 6   ;;  %s2374_s26 = sld [smem:[#allocation31_spill]] }
 0x2fe   : > { %s2375_s27 = sld [smem:[#allocation27_spill]]  ;;  %s2376_s28 = sld [smem:[#allocation28_spill]] }
 0x2ff   : > { %s2377_s29 = sld [smem:[#allocation29_spill]]  ;;  %s2378_s30 = sld [smem:[#allocation30_spill]] }
 0x300   : > { %s2379_s24 = smov %s1895_s25  ;;  %23 = sbr.rel (!%p21_p4) target bundleno = 12 (0xc), region = 106 }
 0x302   : > { %s2380_s25 = smov %s2373_s22 }
 0x307   :  { %947 = vsyncpa [#allocation5], 1 }
 0x308   :  { %949 = vsyncpa [#allocation5 + $0x1], 1 }
 0x309   :  { %950 = vsyncpa [#allocation8], 1 }
 0x30a   :  { %951 = vsyncpa [#allocation11], 1 }
 0x30b   :  { %952 = vsyncpa [#allocation14], 1 }
 0x30c   :  { %953 = vsyncpa [#allocation6], 1 }
 0x30d   :  { %955 = vsyncpa [#allocation6 + $0x1], 1 }
 0x30e   :  { %956 = vsyncmov [#allocation3] }
 0x311   :  { %s957_s15 = vpop.sfrf %956 }
 0x312   :  { %p1090_p3 = scmp.ne.s32.totalorder %s957_s15, 0 }
 0x314   :  { %961 = shalt.err (%p1090_p3)  }

</bundles_post_ra>
